<compile_context>
chip_gen: v7x
topology: tpu7x:2x2x1
jax: 0.10.0
libtpu: 0.0.40
codegen_flags: <defaults>
</compile_context>

<pallas_src>
import functools
import math

import jax
import jax.numpy as jnp
from jax.experimental import pallas as pl
from jax.experimental.pallas import tpu as pltpu

LANE = 128
SUBLANE = 8


def _round_up(x, m):
    return (x + m - 1) // m * m


def _fused_mlp_kernel(*refs, num_layers):
    """refs = (x_ref, w0, b0, w1, b1, ..., w_{L-1}, b_{L-1}, o_ref).

    Static Python layer loop -> fully unrolled at trace time, so each bias
    broadcast happens exactly once per layer (no per-iteration rebroadcast).
    """
    x_ref = refs[0]
    o_ref = refs[-1]
    wb = refs[1:-1]

    h = x_ref[...].astype(jnp.bfloat16)  # (tm, F_in) activations for the MXU
    for li in range(num_layers):
        w = wb[2 * li][...]       # (Fin, Fout_pad) bf16, pre-cast in wrapper
        b = wb[2 * li + 1][...]   # (1, Fout_pad) f32
        # bf16 MXU inputs, explicit f32 accumulation; bias + ReLU on VPU in f32.
        y = jnp.dot(h, w, preferred_element_type=jnp.float32) + b
        if li != num_layers - 1:
            y = jnp.maximum(y, 0.0)
            # TODO(synk): training-mode dropout would be applied here.
            h = y.astype(jnp.bfloat16)
        else:
            h = y
    o_ref[...] = h.astype(o_ref.dtype)


def simple_gcn_forward(x, params, *, row_tile=512):
    """Fused forward pass of SimpleGCN (eval mode) as a single Pallas kernel.

    params: list of (W, b) with W stored as (in_features, out_features).
    All layers except the last apply ReLU.
    """
    n, f_in = x.shape
    num_layers = len(params)
    out_dim = params[-1][0].shape[1]
    assert params[0][0].shape[0] == f_in

    # Per-layer padded feature dims: outputs lane-dense (128-multiples),
    # the network input dim kept natural.
    out_dims = [w.shape[1] for (w, _) in params]
    out_dims_pad = [_round_up(d, LANE) for d in out_dims]
    in_dims = [f_in] + out_dims_pad[:-1]

    # Zero-pad weights/biases; pre-cast weights to bf16 (zero padding keeps the
    # math exact: padded columns stay 0 through matmul, bias add and ReLU).
    padded_wb = []
    for li, (w, b) in enumerate(params):
        fi, fo = w.shape
        w_p = jnp.pad(w, ((0, in_dims[li] - fi), (0, out_dims_pad[li] - fo)))
        b_p = jnp.pad(b.reshape(1, fo), ((0, 0), (0, out_dims_pad[li] - fo)))
        padded_wb += [w_p.astype(jnp.bfloat16), b_p.astype(jnp.float32)]

    kernel = functools.partial(_fused_mlp_kernel, num_layers=num_layers)
    n_pad_min = _round_up(max(n, 1), SUBLANE)

    if n_pad_min <= row_tile:
        # Small-N path: everything trivially fits in VMEM -> no grid, no pipeline.
        n_pad = n_pad_min
        x_p = jnp.pad(x, ((0, n_pad - n), (0, 0)))
        vmem_spec = pl.BlockSpec(memory_space=pltpu.MemorySpace.VMEM)
        out = pl.pallas_call(
            kernel,
            out_shape=jax.ShapeDtypeStruct((n_pad, out_dims_pad[-1]), jnp.float32),
            in_specs=[vmem_spec] * (1 + 2 * num_layers),
            out_specs=vmem_spec,
        )(x_p, *padded_wb)
    else:
        # Large-N path: tile rows; tiny weights/biases stay resident (constant
        # block index => no re-DMA); row axis "parallel" for megacore on v7x.
        n_pad = _round_up(n, row_tile)
        x_p = jnp.pad(x, ((0, n_pad - n), (0, 0)))
        grid = (n_pad // row_tile,)
        in_specs = [pl.BlockSpec((row_tile, f_in), lambda i: (i, 0))]
        for li in range(num_layers):
            fi, fo = in_dims[li], out_dims_pad[li]
            in_specs.append(pl.BlockSpec((fi, fo), lambda i: (0, 0)))
            in_specs.append(pl.BlockSpec((1, fo), lambda i: (0, 0)))
        out = pl.pallas_call(
            kernel,
            out_shape=jax.ShapeDtypeStruct((n_pad, out_dims_pad[-1]), jnp.float32),
            grid=grid,
            in_specs=in_specs,
            out_specs=pl.BlockSpec((row_tile, out_dims_pad[-1]), lambda i: (i, 0)),
            compiler_params=pltpu.CompilerParams(
                dimension_semantics=("parallel",),
                vmem_limit_bytes=32 * 1024 * 1024,  # safe on v7x (64 MiB physical)
            ),
        )(x_p, *padded_wb)

    return out[:n, :out_dim]


def init_params(key, input_dim, hidden_dim, output_dim, num_layers):
    """Deterministic init mimicking nn.Linear (uniform +/- 1/sqrt(fan_in)).

    Weights stored as (in_features, out_features).
    Layer stack: input (in->hid), (num_layers-1) hidden (hid->hid), output (hid->out).
    """
    dims = [input_dim] + [hidden_dim] * num_layers + [output_dim]
    params = []
    for li in range(len(dims) - 1):
        fan_in, fan_out = dims[li], dims[li + 1]
        key, kw, kb = jax.random.split(key, 3)
        bound = 1.0 / math.sqrt(fan_in)
        w = jax.random.uniform(kw, (fan_in, fan_out), jnp.float32, -bound, bound)
        b = jax.random.uniform(kb, (fan_out,), jnp.float32, -bound, bound)
        params.append((w, b))
    return params


def reference_forward(x, params):
    """Pure-JAX reference with the same bf16-input / f32-accumulate precision."""
    h = x
    for i, (w, b) in enumerate(params):
        h = jnp.dot(h.astype(jnp.bfloat16), w.astype(jnp.bfloat16),
                    preferred_element_type=jnp.float32) + b
        if i != len(params) - 1:
            h = jnp.maximum(h, 0.0)
    return h


if __name__ == "__main__":
    # Small shapes consistent with the module: 8 "nodes", input_dim=16,
    # hidden_dim=32, output_dim=4, num_layers=3 (=> 4 linear layers).
    N, INPUT_DIM, HIDDEN_DIM, OUTPUT_DIM, NUM_LAYERS = 8, 16, 32, 4, 3

    key = jax.random.PRNGKey(0)
    key, kx = jax.random.split(key)
    x = jax.random.normal(kx, (N, INPUT_DIM), jnp.float32)
    params = init_params(key, INPUT_DIM, HIDDEN_DIM, OUTPUT_DIM, NUM_LAYERS)

    # Small-N (no-grid, fully fused) path.
    pred = simple_gcn_forward(x, params)
    pred = jax.block_until_ready(pred)
    ref = reference_forward(x, params)
    assert pred.shape == (N, OUTPUT_DIM)
    assert jnp.allclose(pred, ref, atol=1e-4, rtol=1e-4)

    # Large-N (row-tiled, "parallel" grid) path.
    N_BIG = 1024
    key, kx2 = jax.random.split(key)
    x_big = jax.random.normal(kx2, (N_BIG, INPUT_DIM), jnp.float32)
    pred_big = simple_gcn_forward(x_big, params, row_tile=512)
    pred_big = jax.block_until_ready(pred_big)
    ref_big = reference_forward(x_big, params)
    assert pred_big.shape == (N_BIG, OUTPUT_DIM)
    assert jnp.allclose(pred_big, ref_big, atol=1e-4, rtol=1e-4)

    print("KERNEL_OK")
</pallas_src>

<mosaic_0001>
module attributes {stable_mosaic.version = 11 : i64} {
  func.func @_fused_mlp_kernel(%arg0: memref<8x16xf32, #tpu.memory_space<vmem>>, %arg1: memref<16x128xbf16, #tpu.memory_space<vmem>>, %arg2: memref<1x128xf32, #tpu.memory_space<vmem>>, %arg3: memref<128x128xbf16, #tpu.memory_space<vmem>>, %arg4: memref<1x128xf32, #tpu.memory_space<vmem>>, %arg5: memref<128x128xbf16, #tpu.memory_space<vmem>>, %arg6: memref<1x128xf32, #tpu.memory_space<vmem>>, %arg7: memref<128x128xbf16, #tpu.memory_space<vmem>>, %arg8: memref<1x128xf32, #tpu.memory_space<vmem>>, %arg9: memref<8x128xf32, #tpu.memory_space<vmem>>) attributes {dimension_semantics = [], scalar_prefetch = 0 : i64, scratch_operands = 0 : i64, tpu.core_type = #tpu.core_type<tc>} {
    %c0 = arith.constant 0 : index
    %c0_0 = arith.constant 0 : index
    %0 = vector.load %arg0[%c0, %c0_0] : memref<8x16xf32, #tpu.memory_space<vmem>>, vector<8x16xf32>
    %1 = arith.truncf %0 : vector<8x16xf32> to vector<8x16xbf16>
    %c0_1 = arith.constant 0 : index
    %c0_2 = arith.constant 0 : index
    %2 = vector.load %arg1[%c0_1, %c0_2] : memref<16x128xbf16, #tpu.memory_space<vmem>>, vector<16x128xbf16>
    %c0_3 = arith.constant 0 : index
    %c0_4 = arith.constant 0 : index
    %3 = vector.load %arg2[%c0_3, %c0_4] : memref<1x128xf32, #tpu.memory_space<vmem>>, vector<1x128xf32>
    %cst = arith.constant dense<0.000000e+00> : vector<8x128xf32>
    %4 = tpu.matmul %1, %2, %cst {dimension_numbers = #tpu.dot_dimension_numbers<[1], [0], [0], [1], [0, 0, 1, 1], [], []>} : vector<8x16xbf16>, vector<16x128xbf16>, vector<8x128xf32> -> vector<8x128xf32>
    %5 = vector.broadcast %3 : vector<1x128xf32> to vector<8x128xf32>
    %6 = arith.addf %4, %5 : vector<8x128xf32>
    %cst_5 = arith.constant 0.000000e+00 : f32
    %7 = vector.broadcast %cst_5 : f32 to vector<8x128xf32>
    %8 = arith.maximumf %6, %7 : vector<8x128xf32>
    %9 = arith.truncf %8 : vector<8x128xf32> to vector<8x128xbf16>
    %c0_6 = arith.constant 0 : index
    %c0_7 = arith.constant 0 : index
    %10 = vector.load %arg3[%c0_6, %c0_7] : memref<128x128xbf16, #tpu.memory_space<vmem>>, vector<128x128xbf16>
    %c0_8 = arith.constant 0 : index
    %c0_9 = arith.constant 0 : index
    %11 = vector.load %arg4[%c0_8, %c0_9] : memref<1x128xf32, #tpu.memory_space<vmem>>, vector<1x128xf32>
    %cst_10 = arith.constant dense<0.000000e+00> : vector<8x128xf32>
    %12 = tpu.matmul %9, %10, %cst_10 {dimension_numbers = #tpu.dot_dimension_numbers<[1], [0], [0], [1], [0, 0, 1, 1], [], []>} : vector<8x128xbf16>, vector<128x128xbf16>, vector<8x128xf32> -> vector<8x128xf32>
    %13 = vector.broadcast %11 : vector<1x128xf32> to vector<8x128xf32>
    %14 = arith.addf %12, %13 : vector<8x128xf32>
    %cst_11 = arith.constant 0.000000e+00 : f32
    %15 = vector.broadcast %cst_11 : f32 to vector<8x128xf32>
    %16 = arith.maximumf %14, %15 : vector<8x128xf32>
    %17 = arith.truncf %16 : vector<8x128xf32> to vector<8x128xbf16>
    %c0_12 = arith.constant 0 : index
    %c0_13 = arith.constant 0 : index
    %18 = vector.load %arg5[%c0_12, %c0_13] : memref<128x128xbf16, #tpu.memory_space<vmem>>, vector<128x128xbf16>
    %c0_14 = arith.constant 0 : index
    %c0_15 = arith.constant 0 : index
    %19 = vector.load %arg6[%c0_14, %c0_15] : memref<1x128xf32, #tpu.memory_space<vmem>>, vector<1x128xf32>
    %cst_16 = arith.constant dense<0.000000e+00> : vector<8x128xf32>
    %20 = tpu.matmul %17, %18, %cst_16 {dimension_numbers = #tpu.dot_dimension_numbers<[1], [0], [0], [1], [0, 0, 1, 1], [], []>} : vector<8x128xbf16>, vector<128x128xbf16>, vector<8x128xf32> -> vector<8x128xf32>
    %21 = vector.broadcast %19 : vector<1x128xf32> to vector<8x128xf32>
    %22 = arith.addf %20, %21 : vector<8x128xf32>
    %cst_17 = arith.constant 0.000000e+00 : f32
    %23 = vector.broadcast %cst_17 : f32 to vector<8x128xf32>
    %24 = arith.maximumf %22, %23 : vector<8x128xf32>
    %25 = arith.truncf %24 : vector<8x128xf32> to vector<8x128xbf16>
    %c0_18 = arith.constant 0 : index
    %c0_19 = arith.constant 0 : index
    %26 = vector.load %arg7[%c0_18, %c0_19] : memref<128x128xbf16, #tpu.memory_space<vmem>>, vector<128x128xbf16>
    %c0_20 = arith.constant 0 : index
    %c0_21 = arith.constant 0 : index
    %27 = vector.load %arg8[%c0_20, %c0_21] : memref<1x128xf32, #tpu.memory_space<vmem>>, vector<1x128xf32>
    %cst_22 = arith.constant dense<0.000000e+00> : vector<8x128xf32>
    %28 = tpu.matmul %25, %26, %cst_22 {dimension_numbers = #tpu.dot_dimension_numbers<[1], [0], [0], [1], [0, 0, 1, 1], [], []>} : vector<8x128xbf16>, vector<128x128xbf16>, vector<8x128xf32> -> vector<8x128xf32>
    %29 = vector.broadcast %27 : vector<1x128xf32> to vector<8x128xf32>
    %30 = arith.addf %28, %29 : vector<8x128xf32>
    %c0_23 = arith.constant 0 : index
    %c0_24 = arith.constant 0 : index
    %31 = vector.load %arg9[%c0_23, %c0_24] : memref<8x128xf32, #tpu.memory_space<vmem>>, vector<8x128xf32>
    tpu.vector_store %arg9[%c0_23, %c0_24], %30 {strides = array<i32>} : memref<8x128xf32, #tpu.memory_space<vmem>>, vector<8x128xf32>,
    return
  }
}

</mosaic_0001>

<bundles_post_ra>
// kernel: tpu_custom_call.1
= control target key start
LH: loop header
LB: loop body
LE: loop exit
PB: predicated region body
PF: predicated region fallthrough
CT: control target
= control target key end

     0   :  { %14 = vsyncpa [#allocation3], 0  ;;  %s1007_s0 = inlined_call_operand.hbm [shape: f32[8,16], index: 0, kind: input, shape index: {}]   ;;  %s1008_s1 = inlined_call_operand.hbm [shape: bf16[16,128], index: 1, kind: input, shape index: {}]   ;;  %s1009_s2 = inlined_call_operand.vmem [shape: f32[1,128], index: 2, kind: input, shape index: {}]   ;;  %s1010_s3 = inlined_call_operand.hbm [shape: bf16[128,128], index: 3, kind: input, shape index: {}]   ;;  %s1011_s4 = inlined_call_operand.vmem [shape: f32[1,128], index: 4, kind: input, shape index: {}]   ;;  %s1012_s5 = inlined_call_operand.hbm [shape: bf16[128,128], index: 5, kind: input, shape index: {}]   ;;  %s1013_s6 = inlined_call_operand.vmem [shape: f32[1,128], index: 6, kind: input, shape index: {}]   ;;  %s1014_s7 = inlined_call_operand.hbm [shape: bf16[128,128], index: 7, kind: input, shape index: {}]   ;;  %s1015_s8 = inlined_call_operand.vmem [shape: f32[1,128], index: 8, kind: input, shape index: {}]   ;;  %s1016_s9 = inlined_call_operand.hbm [shape: f32[8,128], index: 9, kind: output, shape index: {}]  }
   0x1   :  { %15 = vsyncpa [#allocation6], 0 }
   0x2   :  { %16 = vsyncpa [#allocation9], 0 }
   0x3   :  { %17 = vsyncpa [#allocation4], 0  ;;  %s818_s30 = smov [#allocation5]   ;;  %s678_s13 = scalar_lea.hbm %s1008_s1, 128 }
   0x4   :  { %s33_s10 = sshll.u32 %s818_s30, 4  ;;  %p679_p0 = scmp.ne.s32.totalorder %s1008_s1, %s678_s13  ;;  %s34_s10 = int_to_ptr.vmem [resolvable:$true] %s33_s10 }
   0x5   :  { %p682_p1 = scmp.lt.u32.totalorder %s678_s13, %s1008_s1 }
   0x7   :  { %p684_p2 = pnand %p682_p1, %p679_p0 }
   0x9   :  { %687 = shalt.err (!%p684_p2)
}
   0xa   :  { %s688_s18 = scalar_lea.vmem %s34_s10, 128  ;;  %p693_p4 = scmp.lt.s32.totalorder %s34_s10, %s34_s10 }
   0xb   :  { %p689_p3 = scmp.ne.s32.totalorder %s34_s10, %s688_s18  ;;  %p694_p5 = scmp.lt.s32.totalorder %s688_s18, %s688_s18 }
   0xd   :  { %p695_p6 = por %p694_p5, %p693_p4 }
   0xf   :  { %p696_p7 = pnand %p695_p6, %p689_p3 }
  0x11   :  { %699 = shalt.err (!%p696_p7)
}
  0x12   :  { %s819_s19 = smov 64   ;;  %s820_s20 = smov 4  }
  0x13   :  { %39 = dma.hbm_to_vmem [thread:$0]  %s1008_s1, 128, %s34_s10, [#allocation6], %s819_s19, %s819_s19, %s820_s20  }
  0x14   :  { %s821_s23 = smov [#allocation8]   ;;  %s822_s25 = smov [#allocation2]  }
  0x15   :  { %s61_s24 = sshll.u32 %s821_s23, 4  ;;  %s24_s26 = sshll.u32 %s822_s25, 4  ;;  %s62_s24 = int_to_ptr.vmem [resolvable:$true] %s61_s24  ;;  %s25_s26 = int_to_ptr.vmem [resolvable:$true] %s24_s26 }
  0x16   :  { %s700_s29 = scalar_lea.hbm %s1012_s5, 1024 }
  0x17   :  { %p701_p8 = scmp.ne.s32.totalorder %s1012_s5, %s700_s29  ;;  %p704_p9 = scmp.lt.u32.totalorder %s700_s29, %s1012_s5 }
  0x19   :  { %p706_p10 = pnand %p704_p9, %p701_p8 }
  0x1b   :  { %709 = shalt.err (!%p706_p10)
}
  0x1c   :  { %s710_s1 = scalar_lea.vmem %s62_s24, 1024  ;;  %p715_p12 = scmp.lt.s32.totalorder %s62_s24, %s62_s24 }
  0x1d   :  { %p711_p11 = scmp.ne.s32.totalorder %s62_s24, %s710_s1  ;;  %p716_p13 = scmp.lt.s32.totalorder %s710_s1, %s710_s1 }
  0x1f   :  { %p717_p0 = por %p716_p13, %p715_p12 }
  0x21   :  { %p718_p1 = pnand %p717_p0, %p711_p11 }
  0x23   :  { %721 = shalt.err (!%p718_p1)
}
  0x24   :  { %67 = dma.hbm_to_vmem [thread:$0]  %s1012_s5, 1024, %s62_s24, [#allocation9], %s819_s19, %s819_s19, %s820_s20  }
  0x25   :  { %s722_s17 = scalar_lea.hbm %s1007_s0, 128 }
  0x26   :  { %p723_p2 = scmp.ne.s32.totalorder %s1007_s0, %s722_s17  ;;  %p726_p3 = scmp.lt.u32.totalorder %s722_s17, %s1007_s0 }
  0x28   :  { %p728_p4 = pnand %p726_p3, %p723_p2 }
  0x2a   :  { %731 = shalt.err (!%p728_p4)
}
  0x2b   :  { %s732_s25 = scalar_lea.vmem %s25_s26, 128  ;;  %p737_p6 = scmp.lt.s32.totalorder %s25_s26, %s25_s26 }
  0x2c   :  { %p733_p5 = scmp.ne.s32.totalorder %s25_s26, %s732_s25  ;;  %p738_p7 = scmp.lt.s32.totalorder %s732_s25, %s732_s25 }
  0x2e   :  { %p739_p8 = por %p738_p7, %p737_p6 }
  0x30   :  { %p740_p9 = pnand %p739_p8, %p733_p5 }
  0x32   :  { %743 = shalt.err (!%p740_p9)
}
  0x33   :  { %27 = dma.hbm_to_vmem [thread:$0]  %s1007_s0, 128, %s25_s26, [#allocation3]  }
  0x34   :  { %s823_s27 = smov [#allocation7]   ;;  %s824_s29 = smov [#allocation10]  }
  0x35   :  { %s47_s28 = sshll.u32 %s823_s27, 4  ;;  %s75_s30 = sshll.u32 %s824_s29, 4  ;;  %s48_s28 = int_to_ptr.vmem [resolvable:$true] %s47_s28  ;;  %s76_s30 = int_to_ptr.vmem [resolvable:$true] %s75_s30 }
  0x36   :  { %s744_s13 = scalar_lea.hbm %s1010_s3, 1024 }
  0x37   :  { %p745_p10 = scmp.ne.s32.totalorder %s1010_s3, %s744_s13  ;;  %p748_p11 = scmp.lt.u32.totalorder %s744_s13, %s1010_s3 }
  0x39   :  { %p750_p12 = pnand %p748_p11, %p745_p10 }
  0x3b   :  { %753 = shalt.err (!%p750_p12)
}
  0x3c   :  { %s754_s0 = scalar_lea.vmem %s48_s28, 1024  ;;  %p759_p0 = scmp.lt.s32.totalorder %s48_s28, %s48_s28 }
  0x3d   :  { %p755_p13 = scmp.ne.s32.totalorder %s48_s28, %s754_s0  ;;  %p760_p1 = scmp.lt.s32.totalorder %s754_s0, %s754_s0 }
  0x3f   :  { %p761_p2 = por %p760_p1, %p759_p0 }
  0x41   :  { %p762_p3 = pnand %p761_p2, %p755_p13 }
  0x43   :  { %765 = shalt.err (!%p762_p3)
}
  0x44   :  { %53 = dma.hbm_to_vmem [thread:$0]  %s1010_s3, 1024, %s48_s28, [#allocation6], %s819_s19, %s819_s19, %s820_s20  }
  0x45   :  { %s766_s21 = scalar_lea.hbm %s1014_s7, 1024 }
  0x46   :  { %p767_p4 = scmp.ne.s32.totalorder %s1014_s7, %s766_s21  ;;  %p770_p5 = scmp.lt.u32.totalorder %s766_s21, %s1014_s7 }
  0x48   :  { %p772_p6 = pnand %p770_p5, %p767_p4 }
  0x4a   :  { %775 = shalt.err (!%p772_p6)
}
  0x4b   :  { %s776_s24 = scalar_lea.vmem %s76_s30, 1024  ;;  %p781_p8 = scmp.lt.s32.totalorder %s76_s30, %s76_s30 }
  0x4c   :  { %p777_p7 = scmp.ne.s32.totalorder %s76_s30, %s776_s24  ;;  %p782_p9 = scmp.lt.s32.totalorder %s776_s24, %s776_s24 }
  0x4e   :  { %p783_p10 = por %p782_p9, %p781_p8 }
  0x50   :  { %p784_p11 = pnand %p783_p10, %p777_p7 }
  0x52   :  { %787 = shalt.err (!%p784_p11)
}
  0x53   :  { %81 = dma.hbm_to_vmem [thread:$0]  %s1014_s7, 1024, %s76_s30, [#allocation9], %s819_s19, %s819_s19, %s820_s20  }
  0x54   :  { %810 = dma.done.wait [#allocation3], 128  }
  0x55   :  { %811 = vsyncadd [#allocation3], 4294967168 }
  0x56   :  { %812 = dma.done.wait [#allocation6], 1152  }
  0x57   :  { %813 = vsyncadd [#allocation6], 4294966144 }
  0x58   :  { %814 = dma.done.wait [#allocation9], 2048  }
  0x59   :  { %815 = vsyncadd [#allocation9], 4294965248  ;;  %v825_v0 = vmov 0.0   ;;  %vm826_vm0 = vmmov 0   ;;  %v653_v1 = vld [vmem:[#allocation5] sm:$0xff]   ;;  %v100_v2 = vld [vmem:[#allocation2] sm:$0xff] }
  0x5a   :  { %577 = vmatprep.subr.bf16.mxu0 %v825_v0  ;;  %579 = vmatprep.mubr.msk.bf16.mxu0 %vm826_vm0, %v825_v0  ;;  %v101_v3 = vpack.c.bf16 %v100_v2, %v100_v2  ;;  %vm117_vm1 = vcmask 130048   ;;  %v654_v4 = vld [vmem:[#allocation7] sm:$0xff]   ;;  %v655_v5 = vld [vmem:[#allocation7 + $0x8] sm:$0xff]   ;;  %v656_v6 = vld [vmem:[#allocation7 + $0x10] sm:$0xff]   ;;  %s827_s11 = smov [#allocation11]  }
  0x5b   :  { %583 = vmatprep.subr.bf16.mxu1 %v825_v0  ;;  %599 = vmatprep.mubr.msk.bf16.mxu1 %vm826_vm0, %v825_v0  ;;  %v657_v7 = vld [vmem:[#allocation7 + $0x18] sm:$0xff]   ;;  %v658_v8 = vld [vmem:[#allocation7 + $0x20] sm:$0xff]   ;;  %v659_v9 = vld [vmem:[#allocation7 + $0x28] sm:$0xff]   ;;  %s507_s12 = sshll.u32 %s827_s11, 4  ;;  %s508_s12 = int_to_ptr.vmem [resolvable:$true] %s507_s12 }
  0x5c   :  { %578 = vmatpush3.bf16.msra.mxu0 %v653_v1  ;;  %584 = vmatpush3.bf16.msra.mxu1 %v654_v4  ;;  %v660_v10 = vld [vmem:[#allocation7 + $0x30] sm:$0xff]   ;;  %v661_v11 = vld [vmem:[#allocation7 + $0x38] sm:$0xff]   ;;  %v662_v12 = vld [vmem:[#allocation8] sm:$0xff]   ;;  %p793_p13 = scmp.lt.s32.totalorder %s508_s12, %s508_s12 }
  0x5d   :  { %603 = vmatprep.subr.bf16.mxu0 %v825_v0  ;;  %585 = vmatprep.subr.bf16.mxu1 %v825_v0  ;;  %v663_v13 = vld [vmem:[#allocation8 + $0x8] sm:$0xff]   ;;  %v664_v14 = vld [vmem:[#allocation8 + $0x10] sm:$0xff]   ;;  %v665_v15 = vld [vmem:[#allocation8 + $0x18] sm:$0xff]  }
  0x5e   :  { %v666_v16 = vld [vmem:[#allocation8 + $0x20] sm:$0xff]   ;;  %v667_v17 = vld [vmem:[#allocation8 + $0x28] sm:$0xff]   ;;  %v518_v18 = vld [vmem:[%s1009_s2] ss:$0 sm:$0xff] }
  0x5f   :  { %580 = vmatmul.mubr.msk.bf16.vlgmr.msra.gmra.mrb[0].mxu0 %vm117_vm1, %v101_v3  ;;  %v668_v26 = vld [vmem:[#allocation8 + $0x30] sm:$0xff]   ;;  %v669_v27 = vld [vmem:[#allocation8 + $0x38] sm:$0xff]   ;;  %v670_v28 = vld [vmem:[#allocation10] sm:$0xff]  }
  0x60   :  { %619 = vmatprep.mubr.msk.bf16.mxu0 %vm826_vm0, %v825_v0  ;;  %586 = vmatpush3.bf16.msra.mxu1 %v655_v5  ;;  %v671_v29 = vld [vmem:[#allocation10 + $0x8] sm:$0xff]   ;;  %v672_v30 = vld [vmem:[#allocation10 + $0x10] sm:$0xff]   ;;  %v673_v31 = vld [vmem:[#allocation10 + $0x18] sm:$0xff]  }
  0x61   :  { %587 = vmatprep.subr.bf16.mxu1 %v825_v0  ;;  %604 = vmatpush3.bf16.msra.mxu0 %v662_v12  ;;  %v674_v32 = vld [vmem:[#allocation10 + $0x20] sm:$0xff]   ;;  %v675_v33 = vld [vmem:[#allocation10 + $0x28] sm:$0xff]   ;;  %v521_v34 = vld [vmem:[%s1011_s4] ss:$0 sm:$0xff] }
  0x62   :  { %605 = vmatprep.subr.bf16.mxu0 %v825_v0  ;;  %v676_v42 = vld [vmem:[#allocation10 + $0x30] sm:$0xff]   ;;  %v677_v43 = vld [vmem:[#allocation10 + $0x38] sm:$0xff]  }
  0x63   :  { %v530_v44 = vld [vmem:[%s1013_s6] ss:$0 sm:$0xff]  ;;  %s788_s6 = scalar_lea.vmem %s508_s12, 128 }
  0x64   :  { %588 = vmatpush3.bf16.msra.mxu1 %v656_v6  ;;  %v539_v52 = vld [vmem:[%s1015_s8] ss:$0 sm:$0xff]  ;;  %p789_p12 = scmp.ne.s32.totalorder %s508_s12, %s788_s6  ;;  %p794_p0 = scmp.lt.s32.totalorder %s788_s6, %s788_s6 }
  0x65   :  { %589 = vmatprep.subr.bf16.mxu1 %v825_v0  ;;  %606 = vmatpush3.bf16.msra.mxu0 %v663_v13 }
  0x66   :  { %607 = vmatprep.subr.bf16.mxu0 %v825_v0  ;;  %p795_p1 = por %p794_p0, %p793_p13 }
  0x68   :  { %590 = vmatpush3.bf16.msra.mxu1 %v657_v7  ;;  %p796_p2 = pnand %p795_p1, %p789_p12 }
  0x69   :  { %591 = vmatprep.subr.bf16.mxu1 %v825_v0  ;;  %608 = vmatpush3.bf16.msra.mxu0 %v664_v14 }
  0x6a   :  { %609 = vmatprep.subr.bf16.mxu0 %v825_v0 }
  0x6c   :  { %592 = vmatpush3.bf16.msra.mxu1 %v658_v8 }
  0x6d   :  { %593 = vmatprep.subr.bf16.mxu1 %v825_v0  ;;  %610 = vmatpush3.bf16.msra.mxu0 %v665_v15 }
  0x6e   :  { %611 = vmatprep.subr.bf16.mxu0 %v825_v0 }
  0x70   :  { %594 = vmatpush3.bf16.msra.mxu1 %v659_v9 }
  0x71   :  { %595 = vmatprep.subr.bf16.mxu1 %v825_v0  ;;  %612 = vmatpush3.bf16.msra.mxu0 %v666_v16 }
  0x72   :  { %613 = vmatprep.subr.bf16.mxu0 %v825_v0 }
  0x74   :  { %596 = vmatpush3.bf16.msra.mxu1 %v660_v10 }
  0x75   :  { %597 = vmatprep.subr.bf16.mxu1 %v825_v0  ;;  %614 = vmatpush3.bf16.msra.mxu0 %v667_v17 }
  0x76   :  { %615 = vmatprep.subr.bf16.mxu0 %v825_v0 }
  0x78   :  { %598 = vmatpush3.bf16.msra.mxu1 %v661_v11 }
  0x79   :  { %623 = vmatprep.subr.bf16.mxu1 %v825_v0  ;;  %616 = vmatpush3.bf16.msra.mxu0 %v668_v26 }
  0x7a   :  { %617 = vmatprep.subr.bf16.mxu0 %v825_v0 }
  0x7d   :  { %618 = vmatpush3.bf16.msra.mxu0 %v669_v27 }
 0x132   :  { %v155_v19 = vpop.f32.mrb[0].mxu0 }
 0x133   :  { %v156_v20 = vadd.f32 %v518_v18, %v155_v19  ;;  %v581_v21 = vpop.f32.mrb[1].mxu0 }
 0x134   :  { %v158_v22 = vpop.f32.mrb[2].mxu0 }
 0x135   :  { %v161_v23 = vmax.f32 %v156_v20, 0.0  ;;  %v582_v24 = vpop.f32.mrb[3].mxu0 }
 0x137   :  { %v162_v25 = vpack.c.bf16 %v161_v23, %v161_v23 }
 0x139   :  { %600 = vmatmul.mubr.bf16.vlgmr.msra.gmra.mrb[0].mxu1 %v162_v25 }
 0x13a   :  { %639 = vmatprep.mubr.msk.bf16.mxu1 %vm826_vm0, %v825_v0  ;;  %624 = vmatpush3.bf16.msra.mxu1 %v670_v28 }
 0x13b   :  { %625 = vmatprep.subr.bf16.mxu1 %v825_v0 }
 0x13e   :  { %626 = vmatpush3.bf16.msra.mxu1 %v671_v29 }
 0x13f   :  { %627 = vmatprep.subr.bf16.mxu1 %v825_v0 }
 0x142   :  { %628 = vmatpush3.bf16.msra.mxu1 %v672_v30 }
 0x143   :  { %629 = vmatprep.subr.bf16.mxu1 %v825_v0 }
 0x146   :  { %630 = vmatpush3.bf16.msra.mxu1 %v673_v31 }
 0x147   :  { %631 = vmatprep.subr.bf16.mxu1 %v825_v0 }
 0x14a   :  { %632 = vmatpush3.bf16.msra.mxu1 %v674_v32 }
 0x14b   :  { %633 = vmatprep.subr.bf16.mxu1 %v825_v0 }
 0x14e   :  { %634 = vmatpush3.bf16.msra.mxu1 %v675_v33 }
 0x14f   :  { %635 = vmatprep.subr.bf16.mxu1 %v825_v0 }
 0x152   :  { %636 = vmatpush3.bf16.msra.mxu1 %v676_v42 }
 0x153   :  { %637 = vmatprep.subr.bf16.mxu1 %v825_v0 }
 0x156   :  { %638 = vmatpush3.bf16.msra.mxu1 %v677_v43 }
 0x20c   :  { %v268_v35 = vpop.f32.mrb[0].mxu1 }
 0x20d   :  { %v269_v36 = vadd.f32 %v521_v34, %v268_v35  ;;  %v601_v37 = vpop.f32.mrb[1].mxu1 }
 0x20e   :  { %v271_v38 = vpop.f32.mrb[2].mxu1 }
 0x20f   :  { %v274_v39 = vmax.f32 %v269_v36, 0.0  ;;  %v602_v40 = vpop.f32.mrb[3].mxu1 }
 0x211   :  { %v275_v41 = vpack.c.bf16 %v274_v39, %v274_v39 }
 0x213   :  { %620 = vmatmul.mubr.bf16.vlgmr.msra.gmra.mrb[4].mxu0 %v275_v41 }
 0x2e6   :  { %v381_v45 = vpop.f32.mrb[4].mxu0 }
 0x2e7   :  { %v382_v46 = vadd.f32 %v530_v44, %v381_v45  ;;  %v621_v47 = vpop.f32.mrb[5].mxu0 }
 0x2e8   :  { %v384_v48 = vpop.f32.mrb[6].mxu0 }
 0x2e9   :  { %v387_v49 = vmax.f32 %v382_v46, 0.0  ;;  %v622_v50 = vpop.f32.mrb[7].mxu0 }
 0x2eb   :  { %v388_v51 = vpack.c.bf16 %v387_v49, %v387_v49 }
 0x2ed   :  { %640 = vmatmul.mubr.bf16.vlgmr.msra.gmra.mrb[4].mxu1 %v388_v51 }
 0x3c0   :  { %v494_v53 = vpop.f32.mrb[4].mxu1 }
 0x3c1   :  { %v495_v54 = vadd.f32 %v539_v52, %v494_v53  ;;  %v641_v55 = vpop.f32.mrb[5].mxu1 }
 0x3c2   :  { %v497_v56 = vpop.f32.mrb[6].mxu1 }
 0x3c3   :  { %500 = vst [vmem:[#allocation11] sm:$0xff] %v495_v54  ;;  %v642_v57 = vpop.f32.mrb[7].mxu1 }
 0x3c4   :  { %799 = shalt.err (!%p796_p2)
}
 0x3c5   :  { %s800_s8 = scalar_lea.hbm %s1016_s9, 128 }
 0x3c6   :  { %p801_p3 = scmp.ne.s32.totalorder %s1016_s9, %s800_s8  ;;  %p804_p4 = scmp.lt.u32.totalorder %s800_s8, %s1016_s9 }
 0x3c8   :  { %p806_p5 = pnand %p804_p4, %p801_p3 }
 0x3ca   :  { %809 = shalt.err (!%p806_p5)
}
 0x3cb   :  { %510 = dma.vmem_to_hbm [thread:$0]  %s508_s12, 128, %s1016_s9, [#allocation4]  }
 0x3cc   :  { %816 = dma.done.wait [#allocation4], 128  }
 0x3cd   :  { %817 = vsyncadd [#allocation4], 4294967168 }
 0x3ce   :  { %514 = vsyncpa [#allocation3], 1 }
 0x3cf   :  { %515 = vsyncpa [#allocation6], 1 }
 0x3d0   :  { %516 = vsyncpa [#allocation9], 1 }
 0x3d1   :  { %517 = vsyncpa [#allocation4], 1 }

</bundles_post_ra>
